<compile_context>
chip_gen: v7x
topology: tpu7x:2x2x1
jax: 0.10.0
libtpu: 0.0.40
codegen_flags: <defaults>
</compile_context>

<pallas_src>
import functools

import jax
import jax.numpy as jnp
from jax import lax
from jax.experimental import pallas as pl
from jax.experimental.pallas import tpu as pltpu


def _round_up(x, m):
    return (x + m - 1) // m * m


def _sublane_granularity(dtype):
    # f32 -> 8 rows, bf16/f16 -> 16, int8/fp8 -> 32 (sublane packing).
    itemsize = jnp.dtype(dtype).itemsize
    return max(8, 32 // max(1, itemsize))


def _pick_block_rows(n, c, dtype, requested=None):
    gran = _sublane_granularity(dtype)
    if requested is not None:
        rows = max(gran, _round_up(int(requested), gran))
    else:
        # ~4 MiB per pipeline buffer for the logits tile: with double-buffering
        # this stays well inside the scoped-VMEM defaults on every generation
        # (16 MiB v5e, 32 MiB v6e/v7x) while being big enough to hide DMA.
        budget = 4 * 1024 * 1024
        itemsize = jnp.dtype(dtype).itemsize
        rows = budget // max(1, c * itemsize)
        rows = max(gran, min(rows, 1024))
        rows = (rows // gran) * gran
    rows = min(rows, _round_up(n, gran))
    return rows


def _wce_kernel(logits_ref, target_ref, loss_ref, acc_ce_ref, acc_mask_ref,
                *, the_id, penalty_weight, n_valid, block_rows):
    pid = pl.program_id(0)

    @pl.when(pid == 0)
    def _init():
        acc_ce_ref[...] = jnp.zeros_like(acc_ce_ref)
        acc_mask_ref[...] = jnp.zeros_like(acc_mask_ref)

    logits = logits_ref[...].astype(jnp.float32)      # (TN, C), f32 compute
    tgt = target_ref[...]                             # (TN, 1) int32
    tn, c = logits.shape

    # Mask out rows that only exist because of batch padding.
    row = lax.broadcasted_iota(jnp.int32, (tn, 1), 0) + pid * block_rows
    valid = row < n_valid                              # (TN, 1) bool

    col = lax.broadcasted_iota(jnp.int32, (tn, c), 1)  # class index per lane

    # Numerically stable log-softmax pieces; `shifted` is reused for the
    # exp-sum, the target gather and the argmax (fewer passes over the tile).
    row_max = jnp.max(logits, axis=-1, keepdims=True)             # (TN, 1)
    shifted = logits - row_max                                    # (TN, C)
    sum_exp = jnp.sum(jnp.exp(shifted), axis=-1, keepdims=True)   # (TN, 1)

    # -log softmax[target] = log(sum_exp) - (logit[target] - row_max)
    tgt_shifted = jnp.sum(jnp.where(col == tgt, shifted, 0.0),
                          axis=-1, keepdims=True)                 # (TN, 1)
    ce_rows = jnp.log(sum_exp) - tgt_shifted                      # (TN, 1)

    # argmax over the class axis (first occurrence on ties): maxima are
    # exactly where shifted == 0.
    argmax = jnp.min(jnp.where(shifted == 0.0, col, c),
                     axis=-1, keepdims=True)                      # (TN, 1)
    mask_rows = jnp.logical_and(argmax == the_id,
                                tgt != the_id).astype(jnp.float32)

    zero = jnp.zeros_like(ce_rows)
    acc_ce_ref[...] += jnp.sum(jnp.where(valid, ce_rows, zero), keepdims=True)
    acc_mask_ref[...] += jnp.sum(jnp.where(valid, mask_rows, zero), keepdims=True)

    @pl.when(pid == pl.num_programs(0) - 1)
    def _finalize():
        inv_n = jnp.float32(1.0 / n_valid)   # single final scale (no per-tile mean)
        loss_ref[...] = (acc_ce_ref[...]
                         + jnp.float32(penalty_weight) * acc_mask_ref[...]) * inv_n


def weighted_cross_entropy_loss(output, target, the_id=19, penalty_weight=2.0,
                                block_rows=None):
    """output: (N, C) float logits (f32/bf16/...); target: (N,) int class ids -> scalar."""
    n, c = output.shape
    tn = _pick_block_rows(n, c, output.dtype, block_rows)
    n_pad = _round_up(n, tn)
    if n_pad != n:
        # Pad with benign values; padded rows are masked out inside the kernel.
        output = jnp.pad(output, ((0, n_pad - n), (0, 0)))
        target = jnp.pad(target, ((0, n_pad - n),))
    target2d = target.astype(jnp.int32).reshape(n_pad, 1)
    num_tiles = n_pad // tn

    kernel = functools.partial(
        _wce_kernel,
        the_id=int(the_id),
        penalty_weight=float(penalty_weight),
        n_valid=int(n),
        block_rows=int(tn),
    )

    out = pl.pallas_call(
        kernel,
        out_shape=jax.ShapeDtypeStruct((1, 1), jnp.float32),
        grid_spec=pltpu.PrefetchScalarGridSpec(
            num_scalar_prefetch=0,
            grid=(num_tiles,),
            in_specs=[
                pl.BlockSpec((tn, c), lambda i: (i, 0)),   # logits tile (native dtype)
                pl.BlockSpec((tn, 1), lambda i: (i, 0)),   # target tile
            ],
            out_specs=pl.BlockSpec((1, 1), lambda i: (0, 0)),  # resident accumulator output
            scratch_shapes=[
                pltpu.VMEM((1, 1), jnp.float32),   # running sum of per-row CE
                pltpu.VMEM((1, 1), jnp.float32),   # running sum of penalty mask
            ],
        ),
        compiler_params=pltpu.CompilerParams(
            dimension_semantics=("arbitrary",)),   # carried accumulators => serial axis
    )(output, target2d)
    return out[0, 0]


def _reference(output, target, the_id=19, penalty_weight=2.0):
    logits = output.astype(jnp.float32)
    logp = jax.nn.log_softmax(logits, axis=-1)
    ce = -jnp.mean(jnp.take_along_axis(logp, target[:, None].astype(jnp.int32), axis=-1))
    mask = ((jnp.argmax(logits, axis=-1) == the_id)
            & (target != the_id)).astype(jnp.float32)
    return ce + penalty_weight * jnp.mean(mask)


if __name__ == "__main__":
    key = jax.random.PRNGKey(0)
    k1, k2, k3, k4 = jax.random.split(key, 4)

    # Test 1: f32 logits, single tile (batch=8, classes=32 >= the_id=19).
    n1, c1 = 8, 32
    out1 = jax.random.normal(k1, (n1, c1), dtype=jnp.float32)
    tgt1 = jax.random.randint(k2, (n1,), 0, c1, dtype=jnp.int32)
    loss1 = weighted_cross_entropy_loss(out1, tgt1)
    jax.block_until_ready(loss1)
    ref1 = _reference(out1, tgt1)
    assert jnp.allclose(loss1, ref1, atol=1e-5, rtol=1e-5), (loss1, ref1)

    # Test 2: bf16 logits fed straight into the kernel (no wrapper cast),
    # multiple row tiles with a ragged, masked last tile (batch=70, classes=21).
    n2, c2 = 70, 21
    out2 = jax.random.normal(k3, (n2, c2), dtype=jnp.bfloat16)
    tgt2 = jax.random.randint(k4, (n2,), 0, c2, dtype=jnp.int32)
    loss2 = weighted_cross_entropy_loss(out2, tgt2, block_rows=16)
    jax.block_until_ready(loss2)
    ref2 = _reference(out2, tgt2)
    assert jnp.allclose(loss2, ref2, atol=1e-5, rtol=1e-5), (loss2, ref2)

    print("KERNEL_OK")
</pallas_src>

<mosaic_0001>
module attributes {stable_mosaic.version = 11 : i64} {
  func.func @_wce_kernel(%arg0: i32, %arg1: memref<8x32xf32, #tpu.memory_space<vmem>>, %arg2: memref<8x1xi32, #tpu.memory_space<vmem>>, %arg3: memref<1x1xf32, #tpu.memory_space<vmem>>, %arg4: memref<1x1xf32, #tpu.memory_space<vmem>>, %arg5: memref<1x1xf32, #tpu.memory_space<vmem>>) attributes {dimension_semantics = [#tpu.dimension_semantics<arbitrary>], iteration_bounds = array<i64: 1>, scalar_prefetch = 0 : i64, scratch_operands = 2 : i64, tpu.core_type = #tpu.core_type<tc>, window_params = [{transform_indices = @transform_0, window_bounds = array<i64: 8, 32>}, {transform_indices = @transform_1, window_bounds = array<i64: 8, 1>}, {pipeline_mode = #tpu.pipeline_mode<synchronous>, transform_indices = @transform_2, window_bounds = array<i64: 1, 1>}]} {
    %c0_i32 = arith.constant 0 : i32
    %0 = arith.cmpi eq, %arg0, %c0_i32 : i32
    %1 = arith.extui %0 : i1 to i32
    %c0_i32_0 = arith.constant 0 : i32
    %2 = arith.cmpi ne, %1, %c0_i32_0 : i32
    scf.if %2 {
      %cst_24 = arith.constant 0.000000e+00 : f32
      %62 = vector.broadcast %cst_24 : f32 to vector<1x1xf32>
      %c0_25 = arith.constant 0 : index
      %c0_26 = arith.constant 0 : index
      %63 = vector.load %arg4[%c0_25, %c0_26] : memref<1x1xf32, #tpu.memory_space<vmem>>, vector<1x1xf32>
      tpu.vector_store %arg4[%c0_25, %c0_26], %62 {strides = array<i32>} : memref<1x1xf32, #tpu.memory_space<vmem>>, vector<1x1xf32>,
      %cst_27 = arith.constant 0.000000e+00 : f32
      %64 = vector.broadcast %cst_27 : f32 to vector<1x1xf32>
      %c0_28 = arith.constant 0 : index
      %c0_29 = arith.constant 0 : index
      %65 = vector.load %arg5[%c0_28, %c0_29] : memref<1x1xf32, #tpu.memory_space<vmem>>, vector<1x1xf32>
      tpu.vector_store %arg5[%c0_28, %c0_29], %64 {strides = array<i32>} : memref<1x1xf32, #tpu.memory_space<vmem>>, vector<1x1xf32>,
    } else {
    }
    %c0 = arith.constant 0 : index
    %c0_1 = arith.constant 0 : index
    %3 = vector.load %arg1[%c0, %c0_1] : memref<8x32xf32, #tpu.memory_space<vmem>>, vector<8x32xf32>
    %c0_2 = arith.constant 0 : index
    %c0_3 = arith.constant 0 : index
    %4 = vector.load %arg2[%c0_2, %c0_3] : memref<8x1xi32, #tpu.memory_space<vmem>>, vector<8x1xi32>
    %5 = tpu.iota {dimensions = array<i32: 0>} : vector<8x1xi32>
    %c8_i32 = arith.constant 8 : i32
    %6 = arith.muli %arg0, %c8_i32 : i32
    %7 = vector.broadcast %6 : i32 to vector<8x1xi32>
    %8 = arith.addi %5, %7 : vector<8x1xi32>
    %c8_i32_4 = arith.constant 8 : i32
    %9 = vector.broadcast %c8_i32_4 : i32 to vector<8x1xi32>
    %10 = arith.cmpi slt, %8, %9 : vector<8x1xi32>
    %11 = tpu.iota {dimensions = array<i32: 1>} : vector<8x32xi32>
    %cst = arith.constant dense<0xFF800000> : vector<8xf32>
    %12 = vector.multi_reduction <maximumf>, %3, %cst [1] : vector<8x32xf32> to vector<8xf32>
    %13 = vector.shape_cast %12 : vector<8xf32> to vector<8x1xf32>
    %14 = vector.broadcast %13 : vector<8x1xf32> to vector<8x32xf32>
    %15 = arith.subf %3, %14 : vector<8x32xf32>
    %16 = math.exp %15 : vector<8x32xf32>
    %cst_5 = arith.constant dense<0.000000e+00> : vector<8xf32>
    %17 = vector.multi_reduction <add>, %16, %cst_5 [1] : vector<8x32xf32> to vector<8xf32>
    %18 = vector.shape_cast %17 : vector<8xf32> to vector<8x1xf32>
    %19 = vector.broadcast %4 : vector<8x1xi32> to vector<8x32xi32>
    %20 = arith.cmpi eq, %11, %19 : vector<8x32xi32>
    %cst_6 = arith.constant 0.000000e+00 : f32
    %21 = vector.broadcast %cst_6 : f32 to vector<8x32xf32>
    %22 = arith.select %20, %15, %21 : vector<8x32xi1>, vector<8x32xf32>
    %cst_7 = arith.constant dense<0.000000e+00> : vector<8xf32>
    %23 = vector.multi_reduction <add>, %22, %cst_7 [1] : vector<8x32xf32> to vector<8xf32>
    %24 = vector.shape_cast %23 : vector<8xf32> to vector<8x1xf32>
    %25 = math.log %18 : vector<8x1xf32>
    %26 = arith.subf %25, %24 : vector<8x1xf32>
    %cst_8 = arith.constant 0.000000e+00 : f32
    %27 = vector.broadcast %cst_8 : f32 to vector<8x32xf32>
    %28 = arith.cmpf oeq, %15, %27 : vector<8x32xf32>
    %c32_i32 = arith.constant 32 : i32
    %29 = vector.broadcast %c32_i32 : i32 to vector<8x32xi32>
    %30 = arith.select %28, %11, %29 : vector<8x32xi1>, vector<8x32xi32>
    %cst_9 = arith.constant dense<2147483647> : vector<8xi32>
    %31 = vector.multi_reduction <minsi>, %30, %cst_9 [1] : vector<8x32xi32> to vector<8xi32>
    %32 = vector.shape_cast %31 : vector<8xi32> to vector<8x1xi32>
    %c19_i32 = arith.constant 19 : i32
    %33 = vector.broadcast %c19_i32 : i32 to vector<8x1xi32>
    %34 = arith.cmpi eq, %32, %33 : vector<8x1xi32>
    %c19_i32_10 = arith.constant 19 : i32
    %35 = vector.broadcast %c19_i32_10 : i32 to vector<8x1xi32>
    %36 = arith.cmpi ne, %4, %35 : vector<8x1xi32>
    %37 = arith.andi %34, %36 : vector<8x1xi1>
    %38 = arith.extui %37 : vector<8x1xi1> to vector<8x1xi32>
    %39 = arith.sitofp %38 : vector<8x1xi32> to vector<8x1xf32>
    %cst_11 = arith.constant 0.000000e+00 : f32
    %40 = vector.broadcast %cst_11 : f32 to vector<8x1xf32>
    %c0_12 = arith.constant 0 : index
    %c0_13 = arith.constant 0 : index
    %41 = vector.load %arg4[%c0_12, %c0_13] : memref<1x1xf32, #tpu.memory_space<vmem>>, vector<1x1xf32>
    %42 = arith.select %10, %26, %40 : vector<8x1xi1>, vector<8x1xf32>
    %43 = vector.shape_cast %42 : vector<8x1xf32> to vector<1x8x1xf32>
    %cst_14 = arith.constant dense<0.000000e+00> : vector<1xf32>
    %44 = vector.multi_reduction <add>, %43, %cst_14 [1, 2] : vector<1x8x1xf32> to vector<1xf32>
    %45 = vector.shape_cast %44 : vector<1xf32> to vector<1x1x1xf32>
    %46 = vector.extract %45[0, 0, 0] : f32 from vector<1x1x1xf32>
    %47 = vector.broadcast %46 : f32 to vector<1x1xf32>
    %48 = arith.addf %41, %47 : vector<1x1xf32>
    %c0_15 = arith.constant 0 : index
    %c0_16 = arith.constant 0 : index
    %49 = vector.load %arg4[%c0_15, %c0_16] : memref<1x1xf32, #tpu.memory_space<vmem>>, vector<1x1xf32>
    tpu.vector_store %arg4[%c0_15, %c0_16], %48 {strides = array<i32>} : memref<1x1xf32, #tpu.memory_space<vmem>>, vector<1x1xf32>,
    %c0_17 = arith.constant 0 : index
    %c0_18 = arith.constant 0 : index
    %50 = vector.load %arg5[%c0_17, %c0_18] : memref<1x1xf32, #tpu.memory_space<vmem>>, vector<1x1xf32>
    %51 = arith.select %10, %39, %40 : vector<8x1xi1>, vector<8x1xf32>
    %52 = vector.shape_cast %51 : vector<8x1xf32> to vector<1x8x1xf32>
    %cst_19 = arith.constant dense<0.000000e+00> : vector<1xf32>
    %53 = vector.multi_reduction <add>, %52, %cst_19 [1, 2] : vector<1x8x1xf32> to vector<1xf32>
    %54 = vector.shape_cast %53 : vector<1xf32> to vector<1x1x1xf32>
    %55 = vector.extract %54[0, 0, 0] : f32 from vector<1x1x1xf32>
    %56 = vector.broadcast %55 : f32 to vector<1x1xf32>
    %57 = arith.addf %50, %56 : vector<1x1xf32>
    %c0_20 = arith.constant 0 : index
    %c0_21 = arith.constant 0 : index
    %58 = vector.load %arg5[%c0_20, %c0_21] : memref<1x1xf32, #tpu.memory_space<vmem>>, vector<1x1xf32>
    tpu.vector_store %arg5[%c0_20, %c0_21], %57 {strides = array<i32>} : memref<1x1xf32, #tpu.memory_space<vmem>>, vector<1x1xf32>,
    %c0_i32_22 = arith.constant 0 : i32
    %59 = arith.cmpi eq, %arg0, %c0_i32_22 : i32
    %60 = arith.extui %59 : i1 to i32
    %c0_i32_23 = arith.constant 0 : i32
    %61 = arith.cmpi ne, %60, %c0_i32_23 : i32
    scf.if %61 {
      %c0_24 = arith.constant 0 : index
      %c0_25 = arith.constant 0 : index
      %62 = vector.load %arg4[%c0_24, %c0_25] : memref<1x1xf32, #tpu.memory_space<vmem>>, vector<1x1xf32>
      %c0_26 = arith.constant 0 : index
      %c0_27 = arith.constant 0 : index
      %63 = vector.load %arg5[%c0_26, %c0_27] : memref<1x1xf32, #tpu.memory_space<vmem>>, vector<1x1xf32>
      %cst_28 = arith.constant 2.000000e+00 : f32
      %64 = vector.broadcast %cst_28 : f32 to vector<1x1xf32>
      %65 = arith.mulf %64, %63 : vector<1x1xf32>
      %66 = arith.addf %62, %65 : vector<1x1xf32>
      %cst_29 = arith.constant 1.250000e-01 : f32
      %67 = vector.broadcast %cst_29 : f32 to vector<1x1xf32>
      %68 = arith.mulf %66, %67 : vector<1x1xf32>
      %c0_30 = arith.constant 0 : index
      %c0_31 = arith.constant 0 : index
      %69 = vector.load %arg3[%c0_30, %c0_31] : memref<1x1xf32, #tpu.memory_space<vmem>>, vector<1x1xf32>
      tpu.vector_store %arg3[%c0_30, %c0_31], %68 {strides = array<i32>} : memref<1x1xf32, #tpu.memory_space<vmem>>, vector<1x1xf32>,
    } else {
    }
    return
  }
  func.func @transform_0(%arg0: i32) -> (i32, i32) {
    %c0_i32 = arith.constant 0 : i32
    %c0_i32_0 = arith.constant 0 : i32
    return %arg0, %c0_i32 : i32, i32
  }
  func.func @transform_1(%arg0: i32) -> (i32, i32) {
    %c0_i32 = arith.constant 0 : i32
    %c0_i32_0 = arith.constant 0 : i32
    return %arg0, %c0_i32 : i32, i32
  }
  func.func @transform_2(%arg0: i32) -> (i32, i32) {
    %c0_i32 = arith.constant 0 : i32
    %c0_i32_0 = arith.constant 0 : i32
    %c0_i32_1 = arith.constant 0 : i32
    return %c0_i32, %c0_i32_0 : i32, i32
  }
}

</mosaic_0001>

<bundles_post_ra>
// kernel: tpu_custom_call.1
= control target key start
LH: loop header
LB: loop body
LE: loop exit
PB: predicated region body
PF: predicated region fallthrough
CT: control target
= control target key end

     0   :  { %vm29_vm0 = vcmask 261120   ;;  %s210_s0 = inlined_call_operand.vmem [shape: f32[8,32], index: 0, kind: input, shape index: {}]   ;;  %s211_s1 = inlined_call_operand.vmem [shape: s32[8,1], index: 1, kind: input, shape index: {}]   ;;  %s212_s2 = inlined_call_operand.hbm [shape: f32[1,1], index: 2, kind: output, shape index: {}]  }
   0x1   :  { %v19_v0 = vld [vmem:[%s210_s0] sm:$0xff] }
   0x2   :  { %v20_v1 = vld [vmem:[%s211_s1] sm:$0xff] }
   0x3   :  { %7 = vsyncpa [#allocation5], 0  ;;  %v30_v2 = vsel %vm29_vm0, %v19_v0, -inf  ;;  %v165_v3 = vmov 0   ;;  %v27_v4 = vlaneseq  ;;  %vm16_vm4 = vcmask 0   ;;  %s167_s13 = smov [#allocation4]  }
   0x4   :  { %135 = vset.pattern.permute.xlu1 %v165_v3  ;;  %136 = vset.pattern.permute.xlu0 %v165_v3  ;;  %v166_v22 = vmov 0.0   ;;  %vm68_vm5 = vcmp.ne.s32.totalorder %v20_v1, 19  ;;  %vm74_vm6 = vcmask 7168   ;;  %s119_s14 = sshll.u32 %s167_s13, 4  ;;  %s120_s14 = int_to_ptr.vmem [resolvable:$true] %s119_s14 }
   0x5   :  { %31 = vmax.xlane.f32.xlu0 %v30_v2  ;;  %40 = vperm.xlu1 %135, %v20_v1   ;;  %v28_v5 = vand.u32 127, %v27_v4  ;;  %17 = vst.msk [vmem:[#allocation2] sm:$0x1] %vm16_vm4, %v166_v22  ;;  %18 = vst.msk [vmem:[#allocation3] sm:$0x1] %vm16_vm4, %v166_v22  ;;  %s141_s15 = scalar_lea.vmem %s120_s14, 16  ;;  %p146_p1 = scmp.lt.s32.totalorder %s120_s14, %s120_s14 }
   0x6   :  { %p142_p0 = scmp.ne.s32.totalorder %s120_s14, %s141_s15  ;;  %s145_s16 = scalar_lea.vmem %s120_s14, 32 }
   0x7   :  { %p147_p2 = scmp.lt.s32.totalorder %s145_s16, %s141_s15 }
   0x9   :  { %p148_p3 = por %p147_p2, %p146_p1 }
   0xb   :  { %p149_p4 = pnand %p148_p3, %p142_p0 }
   0xc   :  { %v72_v50 = vld [vmem:[#allocation2] sm:$0x1]  ;;  %v89_v53 = vld [vmem:[#allocation3] sm:$0x1] }
  0x84   :  { %v41_v6 = vpop.permute.xlu1 %40 }
  0x85   :  { %vm42_vm1 = vcmp.eq.s32.totalorder %v28_v5, %v41_v6 }
  0x92   :  { %v32_v7 = vpop.xlane.xlu0 %31 }
  0x93   :  { %v33_v8 = vsub.f32 %v19_v0, %v32_v7 }
  0x95   :  { %v34_v9 = vmul.f32 1.442695, %v33_v8  ;;  %vm50_vm2 = vcmp.eq.f32.partialorder %v33_v8, 0.0  ;;  %v43_v10 = vsel %vm42_vm1, %v33_v8, 0.0 }
  0x96   :  { %v51_v11 = vsel %vm50_vm2, %v28_v5, 32  ;;  %v44_v21 = vsel %vm29_vm0, %v43_v10, 0.0 }
  0x97   :  { %137 = vpow2.f32 %v34_v9  ;;  %v52_v12 = vsel %vm29_vm0, %v51_v11, 2147483647 }
  0x98   :  { %v54_v13 = vshra.s32 %v52_v12, 16  ;;  %v53_v17 = vand.u32 65535, %v52_v12 }
  0x9a   :  { %v56_v14 = vcvt.s32.f32 %v54_v13  ;;  %v55_v19 = vcvt.s32.f32 %v53_v17 }
  0x9c   :  { %57 = vmin.xlane.f32.xlu0 %v56_v14 }
  0xa1   :  { %v138_v15 = vpop.eup %137 }
  0xa2   :  { %v36_v16 = vsel %vm29_vm0, %v138_v15, 0.0 }
  0xa3   :  { %37 = vadd.xlane.f32.xlu1 %v36_v16 }
 0x129   :  { %v58_v18 = vpop.xlane.xlu0 %57 }
 0x12a   :  { %vm59_vm3 = vcmp.eq.f32.partialorder %v56_v14, %v58_v18  ;;  %v64_v24 = vcvt.f32.s32 %v58_v18 }
 0x12b   :  { %v60_v20 = vsel %vm59_vm3, %v55_v19, inf }
 0x12c   :  { %61 = vmin.xlane.f32.xlu0 %v60_v20  ;;  %v65_v27 = vshll.u32 %v64_v24, 16 }
 0x130   :  { %45 = vadd.xlane.f32.xlu0 %v44_v21  ;;  %v38_v23 = vpop.xlane.xlu1 %37 }
 0x131   :  { %139 = vlog2.f32 %v38_v23 }
 0x13b   :  { %v140_v25 = vpop.eup %139 }
 0x13c   :  { %v48_v30 = vmul.f32 0.6931472, %v140_v25 }
 0x1b9   :  { %v62_v26 = vpop.xlane.xlu0 %61 }
 0x1ba   :  { %v63_v28 = vcvt.f32.s32 %v62_v26 }
 0x1bc   :  { %v66_v29 = vadd.s32 %v65_v27, %v63_v28 }
 0x1bd   :  { %v46_v31 = vpop.xlane.xlu0 %45 }
 0x1be   :  { %vm67_vm7 = vcmp.eq.s32.totalorder %v66_v29, 19  ;;  %v49_v32 = vsub.f32 %v48_v30, %v46_v31 }
 0x1bf   :  { %vm69_vm8 = vmand %vm67_vm7, %vm68_vm5 }
 0x1c0   :  { %v75_v33 = vsel %vm74_vm6, %v49_v32, 0.0  ;;  %v127_v34 = vsel %vm69_vm8, 1.0, %v166_v22 }
 0x1c1   :  { %76 = vadd.xlane.f32.xlu0 %v75_v33  ;;  %v91_v35 = vsel %vm74_vm6, %v127_v34, 0.0 }
 0x1c5   :  { %92 = vadd.xlane.f32.xlu0 %v91_v35 }
 0x24e   :  { %v77_v36 = vpop.xlane.xlu0 %76 }
 0x24f   :  { %v78_v37 = vrot.slane %v77_v36, 4 }
 0x251   :  { %v79_v38 = vadd.f32 %v78_v37, %v77_v36 }
 0x252   :  { %v93_v39 = vpop.xlane.xlu0 %92 }
 0x253   :  { %v80_v40 = vrot.slane %v79_v38, 2  ;;  %v94_v41 = vrot.slane %v93_v39, 4 }
 0x255   :  { %v95_v42 = vadd.f32 %v94_v41, %v93_v39  ;;  %v81_v43 = vadd.f32 %v80_v40, %v79_v38 }
 0x257   :  { %v96_v44 = vrot.slane %v95_v42, 2  ;;  %v82_v45 = vrot.slane %v81_v43, 1 }
 0x259   :  { %v97_v46 = vadd.f32 %v96_v44, %v95_v42  ;;  %v83_v47 = vadd.f32 %v82_v45, %v81_v43 }
 0x25b   :  { %128 = vpush %v83_v47  ;;  %v98_v48 = vrot.slane %v97_v46, 1 }
 0x25d   :  { %v99_v49 = vadd.f32 %v98_v48, %v97_v46 }
 0x25f   :  { %130 = vpush %v99_v49 }
 0x28c   :  { %s129_s0 = spop %128 }
 0x28d   :  { %v85_v51 = vstv %s129_s0 }
 0x28e   :  { %v86_v52 = vadd.f32 %v85_v51, %v72_v50 }
 0x290   :  { %88 = vst.msk [vmem:[#allocation2] sm:$0x1] %vm16_vm4, %v86_v52  ;;  %s131_s1 = spop %130 }
 0x291   :  { %v101_v54 = vstv %s131_s1 }
 0x292   :  { %v102_v55 = vadd.f32 %v101_v54, %v89_v53 }
 0x294   :  { %103 = vst.msk [vmem:[#allocation3] sm:$0x1] %vm16_vm4, %v102_v55 }
 0x297   :  { %v107_v58 = vld [vmem:[#allocation2] sm:$0x1] }
 0x29b   :  { %v108_v56 = vld [vmem:[#allocation3] sm:$0x1] }
 0x29c   :  { %v109_v57 = vmul.f32 2.0, %v108_v56 }
 0x29e   :  { %v110_v59 = vadd.f32 %v109_v57, %v107_v58 }
 0x2a0   :  { %v111_v60 = vmul.f32 0.125, %v110_v59 }
 0x2a2   :  { %112 = vst.msk [vmem:[#allocation4] sm:$0x1] %vm16_vm4, %v111_v60 }
 0x2a3   :  { %152 = shalt.err (!%p149_p4)
}
 0x2a4   :  { %s153_s19 = scalar_lea.hbm %s212_s2, 16 }
 0x2a5   :  { %p154_p5 = scmp.ne.s32.totalorder %s212_s2, %s153_s19  ;;  %p157_p6 = scmp.lt.u32.totalorder %s153_s19, %s212_s2 }
 0x2a7   :  { %p159_p7 = pnand %p157_p6, %p154_p5 }
 0x2a9   :  { %162 = shalt.err (!%p159_p7)
}
 0x2aa   :  { %122 = dma.vmem_to_hbm [thread:$0]  %s120_s14, 16, %s212_s2, [#allocation5]  }
 0x2ab   :  { %163 = dma.done.wait [#allocation5], 16  }
 0x2ac   :  { %164 = vsyncadd [#allocation5], 4294967280 }
 0x2ad   :  { %126 = vsyncpa [#allocation5], 1 }

</bundles_post_ra>
